<compile_context>
chip_gen: v5e
topology: v5e:2x2
jax: 0.10.0
libtpu: 0.0.40
codegen_flags: <defaults>
</compile_context>

<pallas_src>
import math

import jax
import jax.numpy as jnp
from jax import lax
from jax.experimental import pallas as pl
from jax.experimental.pallas import tpu as pltpu


def _erf(x):
    # Abramowitz & Stegun 7.1.26 rational approximation (|err| < 1.5e-7).
    # Exact erf (lax.erf) has no Mosaic lowering; this matches torch.nn.GELU()
    # (exact erf) to well within the bf16 tolerance used below.  The divide is
    # routed to the EUP via pl.reciprocal(approx=True).
    a1, a2, a3, a4, a5 = 0.254829592, -0.284496736, 1.421413741, -1.453152027, 1.061405429
    p = 0.3275911
    s = jnp.where(x >= 0.0, 1.0, -1.0)
    ax = jnp.abs(x)
    t = pl.reciprocal(1.0 + p * ax, approx=True)
    poly = ((((a5 * t + a4) * t + a3) * t + a2) * t + a1) * t
    return s * (1.0 - poly * jnp.exp(-ax * ax))


def _gelu(x):
    return 0.5 * x * (1.0 + _erf(x * (1.0 / math.sqrt(2.0))))


def dwn_block_kernel(
    x_ref,        # (1, Lt, D)   input sequence tile (f32)
    lam_ref,      # (1, 2N)      [lambda_re | lambda_im]              (f32)
    w_in_ref,     # (D, 2N+D)    [gamma*B_re^T | gamma*B_im^T | D^T]  (bf16)
    w_c_ref,      # (2N, D)      [C_re^T ; -C_im^T]                   (bf16)
    w_glu_ref,    # (D, 2D)      [Wa | Wb]                            (bf16)
    b_glu_ref,    # (1, 2D)      [ba | bb]                            (f32)
    out_ref,      # (1, Lt, D)
    h_carry,      # VMEM (1, 2N) f32 -- LRU state carried across sequence tiles
):
    n2 = lam_ref.shape[-1]
    n = n2 // 2

    # Reset the recurrent state at the start of every sequence (seq tile 0).
    @pl.when(pl.program_id(1) == 0)
    def _():
        h_carry[...] = jnp.zeros_like(h_carry)

    u = x_ref[0]                                    # (Lt, D) f32
    lt, d_model = u.shape
    u_bf = u.astype(jnp.bfloat16)

    # One fused MXU pass: [gamma*(B_re u) | gamma*(B_im u) | D u].
    proj = jnp.dot(u_bf, w_in_ref[...], preferred_element_type=jnp.float32)
    b_re = proj[:, :n]                              # (Lt, N)
    b_im = proj[:, n:n2]                            # (Lt, N)
    du = proj[:, n2:]                               # (Lt, D)

    lam_re = lam_ref[:, :n]                         # (1, N)
    lam_im = lam_ref[:, n:]

    # ---- complex diagonal recurrence as a log-depth (Hillis-Steele) scan ----
    # Elements are affine maps h -> a*h + b with a = lambda (complex).  After
    # ceil(log2(Lt)) combine passes, (a[t], b[t]) = (lambda^(t+1), h_t | h_init=0).
    a_re = jnp.broadcast_to(lam_re, (lt, n))
    a_im = jnp.broadcast_to(lam_im, (lt, n))
    dshift = 1
    while dshift < lt:                              # static Python loop (unrolled)
        keep = lt - dshift
        ash_re = jnp.concatenate([jnp.ones((dshift, n), jnp.float32), a_re[:keep]], axis=0)
        ash_im = jnp.concatenate([jnp.zeros((dshift, n), jnp.float32), a_im[:keep]], axis=0)
        bsh_re = jnp.concatenate([jnp.zeros((dshift, n), jnp.float32), b_re[:keep]], axis=0)
        bsh_im = jnp.concatenate([jnp.zeros((dshift, n), jnp.float32), b_im[:keep]], axis=0)
        nb_re = a_re * bsh_re - a_im * bsh_im + b_re
        nb_im = a_re * bsh_im + a_im * bsh_re + b_im
        na_re = a_re * ash_re - a_im * ash_im
        na_im = a_re * ash_im + a_im * ash_re
        a_re, a_im, b_re, b_im = na_re, na_im, nb_re, nb_im
        dshift *= 2

    # Apply the cross-tile carry:  h_t = lambda^(t+1) * h_prev + scan_t.
    hp_re = h_carry[:, :n]                          # (1, N)
    hp_im = h_carry[:, n:]
    h_re = a_re * hp_re - a_im * hp_im + b_re       # (Lt, N)
    h_im = a_re * hp_im + a_im * hp_re + b_im

    # Update the carry with the last timestep of this tile.
    h_carry[...] = jnp.concatenate([h_re[lt - 1:lt, :], h_im[lt - 1:lt, :]], axis=1)

    # y = Re(C h) + D u  — second fused MXU pass.
    h_cat = jnp.concatenate([h_re, h_im], axis=1).astype(jnp.bfloat16)   # (Lt, 2N)
    y = jnp.dot(h_cat, w_c_ref[...], preferred_element_type=jnp.float32) + du

    # GLU feed-forward: GELU -> Linear(d, 2d) -> a * sigmoid(b) — third MXU pass.
    g = _gelu(y).astype(jnp.bfloat16)
    glu = jnp.dot(g, w_glu_ref[...], preferred_element_type=jnp.float32) + b_glu_ref[...]
    z = glu[:, :d_model] * jax.nn.sigmoid(glu[:, d_model:])

    # Residual connection.
    out_ref[0] = (z + u).astype(out_ref.dtype)


def _pick_seq_tile(length, target=512):
    """Largest divisor of `length` that is <= target and a multiple of 8."""
    if length <= target:
        return length
    for t in range(min(target, length), 7, -1):
        if length % t == 0 and t % 8 == 0:
            return t
    return length


def dwn_block(x, params, *, seq_tile=None):
    """x: (batch, seq, d_model) float32."""
    batch, seq_len, d_model = x.shape
    n2 = params["lam"].shape[-1]

    if seq_tile is None:
        seq_tile = _pick_seq_tile(seq_len)
    assert seq_len % seq_tile == 0, "seq_tile must divide seq_len"
    assert seq_tile == seq_len or seq_tile % 8 == 0, "seq_tile must be a multiple of 8"
    num_tiles = seq_len // seq_tile

    # Weights live untiled & resident in VMEM (no per-step double buffering).
    resident = pl.BlockSpec(memory_space=pltpu.MemorySpace.VMEM)

    grid_spec = pltpu.PrefetchScalarGridSpec(
        num_scalar_prefetch=0,
        grid=(batch, num_tiles),                    # seq (carry) axis is last
        in_specs=[
            pl.BlockSpec((1, seq_tile, d_model), lambda b, s: (b, s, 0)),   # x tile
            resident,   # lam
            resident,   # w_in
            resident,   # w_c
            resident,   # w_glu
            resident,   # b_glu
        ],
        out_specs=pl.BlockSpec((1, seq_tile, d_model), lambda b, s: (b, s, 0)),
        scratch_shapes=[pltpu.VMEM((1, n2), jnp.float32)],   # LRU state carry
    )
    return pl.pallas_call(
        dwn_block_kernel,
        out_shape=jax.ShapeDtypeStruct((batch, seq_len, d_model), x.dtype),
        grid_spec=grid_spec,
        compiler_params=pltpu.CompilerParams(
            dimension_semantics=("parallel", "arbitrary"),
            vmem_limit_bytes=48 * 1024 * 1024,
        ),
    )(x, params["lam"], params["w_in"], params["w_c"], params["w_glu"], params["b_glu"])


def init_raw_params(key, d_model, d_state, rmin=0.0, rmax=1.0, max_phase=2 * math.pi):
    """Deterministic synthetic init mirroring LRU / GLU parameter shapes (f32)."""
    ks = jax.random.split(key, 9)
    u1 = jax.random.uniform(ks[0], (d_state,))
    u2 = jax.random.uniform(ks[1], (d_state,))
    nu_log = jnp.log(-0.5 * jnp.log(u1 * (rmax + rmin) * (rmax - rmin) + rmin ** 2))
    theta_log = jnp.log(max_phase * u2)
    lam_mod = jnp.exp(-jnp.exp(nu_log))
    gamma = jnp.sqrt(1.0 - lam_mod ** 2)            # exp(gamma_log)
    theta = jnp.exp(theta_log)

    B_re = jax.random.normal(ks[2], (d_state, d_model)) / math.sqrt(2 * d_model)
    B_im = jax.random.normal(ks[3], (d_state, d_model)) / math.sqrt(2 * d_model)
    C_re = jax.random.normal(ks[4], (d_model, d_state)) / math.sqrt(d_state)
    C_im = jax.random.normal(ks[5], (d_model, d_state)) / math.sqrt(d_state)
    Dmat = jax.random.normal(ks[6], (d_model, d_model)) / math.sqrt(d_model)

    # GLU feed-forward: Linear(d_model, 2*d_model) then GLU(dim=-1)
    bound = 1.0 / math.sqrt(d_model)
    W = jax.random.uniform(ks[7], (2 * d_model, d_model), minval=-bound, maxval=bound)
    bvec = jax.random.uniform(ks[8], (2 * d_model,), minval=-bound, maxval=bound)

    f32 = jnp.float32
    return dict(
        lam_re=(lam_mod * jnp.cos(theta)).astype(f32),
        lam_im=(lam_mod * jnp.sin(theta)).astype(f32),
        gamma=gamma.astype(f32),
        B_re=B_re.astype(f32), B_im=B_im.astype(f32),
        C_re=C_re.astype(f32), C_im=C_im.astype(f32),
        D=Dmat.astype(f32), W=W.astype(f32), b=bvec.astype(f32),
    )


def pack_params(raw):
    """Fuse & cast parameters into the layout expected by the kernel."""
    d_model = raw["D"].shape[0]
    d_state = raw["lam_re"].shape[0]
    bf16 = jnp.bfloat16
    # gamma folded into B; re/im and the D skip weight fused into one matmul.
    w_bu = jnp.concatenate(
        [(raw["B_re"] * raw["gamma"][:, None]).T,
         (raw["B_im"] * raw["gamma"][:, None]).T], axis=1)                 # (D, 2N)
    w_in = jnp.concatenate([w_bu, raw["D"].T], axis=1).astype(bf16)        # (D, 2N+D)
    w_c = jnp.concatenate([raw["C_re"].T, -raw["C_im"].T], axis=0).astype(bf16)  # (2N, D)
    w_glu = raw["W"].T.astype(bf16)                                        # (D, 2D)
    return dict(
        lam=jnp.concatenate([raw["lam_re"], raw["lam_im"]]).reshape(1, 2 * d_state),
        w_in=w_in,
        w_c=w_c,
        w_glu=w_glu,
        b_glu=raw["b"].reshape(1, 2 * d_model).astype(jnp.float32),
    )


def reference(x, raw):
    """Pure-JAX f32 reference of DWNBlock.forward (complex LRU scan + GLU + skip)."""
    lam = (raw["lam_re"] + 1j * raw["lam_im"]).astype(jnp.complex64)
    Bc = (raw["B_re"] + 1j * raw["B_im"]).astype(jnp.complex64)
    Cc = (raw["C_re"] + 1j * raw["C_im"]).astype(jnp.complex64)
    gam = raw["gamma"]
    Dm = raw["D"]

    def scan_one(u_seq):
        def step(h, u_t):
            h = lam * h + gam * (Bc @ u_t.astype(Bc.dtype))
            y = (Cc @ h).real + Dm @ u_t
            return h, y
        h0 = jnp.zeros((lam.shape[0],), jnp.complex64)
        _, ys = lax.scan(step, h0, u_seq)
        return ys

    y = jax.vmap(scan_one)(x)
    g = jax.nn.gelu(y, approximate=False)
    lin = g @ raw["W"].T + raw["b"]
    d_model = Dm.shape[0]
    z = lin[..., :d_model] * jax.nn.sigmoid(lin[..., d_model:])
    return z + x


if __name__ == "__main__":
    key = jax.random.PRNGKey(0)
    kx, kp = jax.random.split(key)

    batch, seq_len, d_model, d_state = 2, 16, 16, 32
    x = jax.random.normal(kx, (batch, seq_len, d_model), dtype=jnp.float32)
    raw = init_raw_params(kp, d_model, d_state)
    params = pack_params(raw)

    ref = jax.block_until_ready(reference(x, raw))

    # Whole sequence in one tile ...
    out_full = jax.block_until_ready(dwn_block(x, params))
    # ... and two sequence tiles, exercising the cross-tile LRU state carry.
    out_tiled = jax.block_until_ready(dwn_block(x, params, seq_tile=8))

    assert out_full.shape == x.shape and out_tiled.shape == x.shape
    # bf16 MXU operands (f32 accumulation) -> looser tolerance than pure f32.
    tol = 5e-2
    for name, out in (("full", out_full), ("tiled", out_tiled)):
        max_err = float(jnp.max(jnp.abs(out - ref)))
        if max_err > tol:
            raise AssertionError(f"kernel/reference mismatch ({name}): max abs err {max_err}")
    print("KERNEL_OK")
</pallas_src>

<mosaic_0001>
module attributes {stable_mosaic.version = 11 : i64} {
  func.func @dwn_block_kernel(%arg0: i32, %arg1: i32, %arg2: memref<1x16x16xf32, #tpu.memory_space<vmem>>, %arg3: memref<1x64xf32, #tpu.memory_space<vmem>>, %arg4: memref<16x80xbf16, #tpu.memory_space<vmem>>, %arg5: memref<64x16xbf16, #tpu.memory_space<vmem>>, %arg6: memref<16x32xbf16, #tpu.memory_space<vmem>>, %arg7: memref<1x32xf32, #tpu.memory_space<vmem>>, %arg8: memref<1x16x16xf32, #tpu.memory_space<vmem>>, %arg9: memref<1x64xf32, #tpu.memory_space<vmem>>) attributes {dimension_semantics = [#tpu.dimension_semantics<parallel>, #tpu.dimension_semantics<arbitrary>], iteration_bounds = array<i64: 2, 1>, scalar_prefetch = 0 : i64, scratch_operands = 1 : i64, tpu.core_type = #tpu.core_type<tc>, window_params = [{transform_indices = @transform_0, window_bounds = array<i64: 1, 16, 16>}, {pipeline_mode = #tpu.pipeline_mode<synchronous>, transform_indices = @transform_1, window_bounds = array<i64: 1, 64>}, {pipeline_mode = #tpu.pipeline_mode<synchronous>, transform_indices = @transform_2, window_bounds = array<i64: 16, 80>}, {pipeline_mode = #tpu.pipeline_mode<synchronous>, transform_indices = @transform_3, window_bounds = array<i64: 64, 16>}, {pipeline_mode = #tpu.pipeline_mode<synchronous>, transform_indices = @transform_4, window_bounds = array<i64: 16, 32>}, {pipeline_mode = #tpu.pipeline_mode<synchronous>, transform_indices = @transform_5, window_bounds = array<i64: 1, 32>}, {transform_indices = @transform_6, window_bounds = array<i64: 1, 16, 16>}]} {
    %c0_i32 = arith.constant 0 : i32
    %0 = arith.cmpi eq, %arg1, %c0_i32 : i32
    %1 = arith.extui %0 : i1 to i32
    %c0_i32_0 = arith.constant 0 : i32
    %2 = arith.cmpi ne, %1, %c0_i32_0 : i32
    scf.if %2 {
      %cst_57 = arith.constant 0.000000e+00 : f32
      %202 = vector.broadcast %cst_57 : f32 to vector<1x64xf32>
      %c0_58 = arith.constant 0 : index
      %c0_59 = arith.constant 0 : index
      %203 = vector.load %arg9[%c0_58, %c0_59] : memref<1x64xf32, #tpu.memory_space<vmem>>, vector<1x64xf32>
      tpu.vector_store %arg9[%c0_58, %c0_59], %202 {strides = array<i32>} : memref<1x64xf32, #tpu.memory_space<vmem>>, vector<1x64xf32>,
    } else {
    }
    %c0 = arith.constant 0 : index
    %c0_1 = arith.constant 0 : index
    %c0_2 = arith.constant 0 : index
    %3 = vector.load %arg2[%c0, %c0_1, %c0_2] : memref<1x16x16xf32, #tpu.memory_space<vmem>>, vector<1x16x16xf32>
    %4 = vector.shape_cast %3 : vector<1x16x16xf32> to vector<16x16xf32>
    %5 = arith.truncf %4 : vector<16x16xf32> to vector<16x16xbf16>
    %c0_3 = arith.constant 0 : index
    %c0_4 = arith.constant 0 : index
    %6 = vector.load %arg4[%c0_3, %c0_4] : memref<16x80xbf16, #tpu.memory_space<vmem>>, vector<16x80xbf16>
    %cst = arith.constant dense<0.000000e+00> : vector<16x80xf32>
    %7 = tpu.matmul %5, %6, %cst {dimension_numbers = #tpu.dot_dimension_numbers<[1], [0], [0], [1], [0, 0, 1, 1], [], []>} : vector<16x16xbf16>, vector<16x80xbf16>, vector<16x80xf32> -> vector<16x80xf32>
    %8 = vector.extract_strided_slice %7 {offsets = [0, 0], sizes = [16, 32], strides = [1, 1]} : vector<16x80xf32> to vector<16x32xf32>
    %9 = vector.extract_strided_slice %7 {offsets = [0, 32], sizes = [16, 32], strides = [1, 1]} : vector<16x80xf32> to vector<16x32xf32>
    %10 = vector.extract_strided_slice %7 {offsets = [0, 64], sizes = [16, 16], strides = [1, 1]} : vector<16x80xf32> to vector<16x16xf32>
    %c0_5 = arith.constant 0 : index
    %c0_6 = arith.constant 0 : index
    %11 = vector.load %arg3[%c0_5, %c0_6] : memref<1x64xf32, #tpu.memory_space<vmem>>, vector<1x32xf32>
    %c0_7 = arith.constant 0 : index
    %c32 = arith.constant 32 : index
    %12 = vector.load %arg3[%c0_7, %c32] : memref<1x64xf32, #tpu.memory_space<vmem>>, vector<1x32xf32>
    %13 = vector.shape_cast %11 : vector<1x32xf32> to vector<1x32xf32>
    %14 = vector.broadcast %13 : vector<1x32xf32> to vector<16x32xf32>
    %15 = vector.shape_cast %12 : vector<1x32xf32> to vector<1x32xf32>
    %16 = vector.broadcast %15 : vector<1x32xf32> to vector<16x32xf32>
    %cst_8 = arith.constant 1.000000e+00 : f32
    %17 = vector.broadcast %cst_8 : f32 to vector<1x32xf32>
    %18 = vector.extract_strided_slice %14 {offsets = [0, 0], sizes = [15, 32], strides = [1, 1]} : vector<16x32xf32> to vector<15x32xf32>
    %19 = tpu.concatenate %17, %18 in 0 : vector<1x32xf32>, vector<15x32xf32> -> vector<16x32xf32>
    %cst_9 = arith.constant 0.000000e+00 : f32
    %20 = vector.broadcast %cst_9 : f32 to vector<1x32xf32>
    %21 = vector.extract_strided_slice %16 {offsets = [0, 0], sizes = [15, 32], strides = [1, 1]} : vector<16x32xf32> to vector<15x32xf32>
    %22 = tpu.concatenate %20, %21 in 0 : vector<1x32xf32>, vector<15x32xf32> -> vector<16x32xf32>
    %cst_10 = arith.constant 0.000000e+00 : f32
    %23 = vector.broadcast %cst_10 : f32 to vector<1x32xf32>
    %24 = vector.extract_strided_slice %8 {offsets = [0, 0], sizes = [15, 32], strides = [1, 1]} : vector<16x32xf32> to vector<15x32xf32>
    %25 = tpu.concatenate %23, %24 in 0 : vector<1x32xf32>, vector<15x32xf32> -> vector<16x32xf32>
    %cst_11 = arith.constant 0.000000e+00 : f32
    %26 = vector.broadcast %cst_11 : f32 to vector<1x32xf32>
    %27 = vector.extract_strided_slice %9 {offsets = [0, 0], sizes = [15, 32], strides = [1, 1]} : vector<16x32xf32> to vector<15x32xf32>
    %28 = tpu.concatenate %26, %27 in 0 : vector<1x32xf32>, vector<15x32xf32> -> vector<16x32xf32>
    %29 = arith.mulf %14, %25 : vector<16x32xf32>
    %30 = arith.mulf %16, %28 : vector<16x32xf32>
    %31 = arith.subf %29, %30 : vector<16x32xf32>
    %32 = arith.addf %31, %8 : vector<16x32xf32>
    %33 = arith.mulf %14, %28 : vector<16x32xf32>
    %34 = arith.mulf %16, %25 : vector<16x32xf32>
    %35 = arith.addf %33, %34 : vector<16x32xf32>
    %36 = arith.addf %35, %9 : vector<16x32xf32>
    %37 = arith.mulf %14, %19 : vector<16x32xf32>
    %38 = arith.mulf %16, %22 : vector<16x32xf32>
    %39 = arith.subf %37, %38 : vector<16x32xf32>
    %40 = arith.mulf %14, %22 : vector<16x32xf32>
    %41 = arith.mulf %16, %19 : vector<16x32xf32>
    %42 = arith.addf %40, %41 : vector<16x32xf32>
    %cst_12 = arith.constant 1.000000e+00 : f32
    %43 = vector.broadcast %cst_12 : f32 to vector<2x32xf32>
    %44 = vector.extract_strided_slice %39 {offsets = [0, 0], sizes = [14, 32], strides = [1, 1]} : vector<16x32xf32> to vector<14x32xf32>
    %45 = tpu.concatenate %43, %44 in 0 : vector<2x32xf32>, vector<14x32xf32> -> vector<16x32xf32>
    %cst_13 = arith.constant 0.000000e+00 : f32
    %46 = vector.broadcast %cst_13 : f32 to vector<2x32xf32>
    %47 = vector.extract_strided_slice %42 {offsets = [0, 0], sizes = [14, 32], strides = [1, 1]} : vector<16x32xf32> to vector<14x32xf32>
    %48 = tpu.concatenate %46, %47 in 0 : vector<2x32xf32>, vector<14x32xf32> -> vector<16x32xf32>
    %cst_14 = arith.constant 0.000000e+00 : f32
    %49 = vector.broadcast %cst_14 : f32 to vector<2x32xf32>
    %50 = vector.extract_strided_slice %32 {offsets = [0, 0], sizes = [14, 32], strides = [1, 1]} : vector<16x32xf32> to vector<14x32xf32>
    %51 = tpu.concatenate %49, %50 in 0 : vector<2x32xf32>, vector<14x32xf32> -> vector<16x32xf32>
    %cst_15 = arith.constant 0.000000e+00 : f32
    %52 = vector.broadcast %cst_15 : f32 to vector<2x32xf32>
    %53 = vector.extract_strided_slice %36 {offsets = [0, 0], sizes = [14, 32], strides = [1, 1]} : vector<16x32xf32> to vector<14x32xf32>
    %54 = tpu.concatenate %52, %53 in 0 : vector<2x32xf32>, vector<14x32xf32> -> vector<16x32xf32>
    %55 = arith.mulf %39, %51 : vector<16x32xf32>
    %56 = arith.mulf %42, %54 : vector<16x32xf32>
    %57 = arith.subf %55, %56 : vector<16x32xf32>
    %58 = arith.addf %57, %32 : vector<16x32xf32>
    %59 = arith.mulf %39, %54 : vector<16x32xf32>
    %60 = arith.mulf %42, %51 : vector<16x32xf32>
    %61 = arith.addf %59, %60 : vector<16x32xf32>
    %62 = arith.addf %61, %36 : vector<16x32xf32>
    %63 = arith.mulf %39, %45 : vector<16x32xf32>
    %64 = arith.mulf %42, %48 : vector<16x32xf32>
    %65 = arith.subf %63, %64 : vector<16x32xf32>
    %66 = arith.mulf %39, %48 : vector<16x32xf32>
    %67 = arith.mulf %42, %45 : vector<16x32xf32>
    %68 = arith.addf %66, %67 : vector<16x32xf32>
    %cst_16 = arith.constant 1.000000e+00 : f32
    %69 = vector.broadcast %cst_16 : f32 to vector<4x32xf32>
    %70 = vector.extract_strided_slice %65 {offsets = [0, 0], sizes = [12, 32], strides = [1, 1]} : vector<16x32xf32> to vector<12x32xf32>
    %71 = tpu.concatenate %69, %70 in 0 : vector<4x32xf32>, vector<12x32xf32> -> vector<16x32xf32>
    %cst_17 = arith.constant 0.000000e+00 : f32
    %72 = vector.broadcast %cst_17 : f32 to vector<4x32xf32>
    %73 = vector.extract_strided_slice %68 {offsets = [0, 0], sizes = [12, 32], strides = [1, 1]} : vector<16x32xf32> to vector<12x32xf32>
    %74 = tpu.concatenate %72, %73 in 0 : vector<4x32xf32>, vector<12x32xf32> -> vector<16x32xf32>
    %cst_18 = arith.constant 0.000000e+00 : f32
    %75 = vector.broadcast %cst_18 : f32 to vector<4x32xf32>
    %76 = vector.extract_strided_slice %58 {offsets = [0, 0], sizes = [12, 32], strides = [1, 1]} : vector<16x32xf32> to vector<12x32xf32>
    %77 = tpu.concatenate %75, %76 in 0 : vector<4x32xf32>, vector<12x32xf32> -> vector<16x32xf32>
    %cst_19 = arith.constant 0.000000e+00 : f32
    %78 = vector.broadcast %cst_19 : f32 to vector<4x32xf32>
    %79 = vector.extract_strided_slice %62 {offsets = [0, 0], sizes = [12, 32], strides = [1, 1]} : vector<16x32xf32> to vector<12x32xf32>
    %80 = tpu.concatenate %78, %79 in 0 : vector<4x32xf32>, vector<12x32xf32> -> vector<16x32xf32>
    %81 = arith.mulf %65, %77 : vector<16x32xf32>
    %82 = arith.mulf %68, %80 : vector<16x32xf32>
    %83 = arith.subf %81, %82 : vector<16x32xf32>
    %84 = arith.addf %83, %58 : vector<16x32xf32>
    %85 = arith.mulf %65, %80 : vector<16x32xf32>
    %86 = arith.mulf %68, %77 : vector<16x32xf32>
    %87 = arith.addf %85, %86 : vector<16x32xf32>
    %88 = arith.addf %87, %62 : vector<16x32xf32>
    %89 = arith.mulf %65, %71 : vector<16x32xf32>
    %90 = arith.mulf %68, %74 : vector<16x32xf32>
    %91 = arith.subf %89, %90 : vector<16x32xf32>
    %92 = arith.mulf %65, %74 : vector<16x32xf32>
    %93 = arith.mulf %68, %71 : vector<16x32xf32>
    %94 = arith.addf %92, %93 : vector<16x32xf32>
    %cst_20 = arith.constant 1.000000e+00 : f32
    %95 = vector.broadcast %cst_20 : f32 to vector<8x32xf32>
    %96 = vector.extract_strided_slice %91 {offsets = [0, 0], sizes = [8, 32], strides = [1, 1]} : vector<16x32xf32> to vector<8x32xf32>
    %97 = tpu.concatenate %95, %96 in 0 : vector<8x32xf32>, vector<8x32xf32> -> vector<16x32xf32>
    %cst_21 = arith.constant 0.000000e+00 : f32
    %98 = vector.broadcast %cst_21 : f32 to vector<8x32xf32>
    %99 = vector.extract_strided_slice %94 {offsets = [0, 0], sizes = [8, 32], strides = [1, 1]} : vector<16x32xf32> to vector<8x32xf32>
    %100 = tpu.concatenate %98, %99 in 0 : vector<8x32xf32>, vector<8x32xf32> -> vector<16x32xf32>
    %cst_22 = arith.constant 0.000000e+00 : f32
    %101 = vector.broadcast %cst_22 : f32 to vector<8x32xf32>
    %102 = vector.extract_strided_slice %84 {offsets = [0, 0], sizes = [8, 32], strides = [1, 1]} : vector<16x32xf32> to vector<8x32xf32>
    %103 = tpu.concatenate %101, %102 in 0 : vector<8x32xf32>, vector<8x32xf32> -> vector<16x32xf32>
    %cst_23 = arith.constant 0.000000e+00 : f32
    %104 = vector.broadcast %cst_23 : f32 to vector<8x32xf32>
    %105 = vector.extract_strided_slice %88 {offsets = [0, 0], sizes = [8, 32], strides = [1, 1]} : vector<16x32xf32> to vector<8x32xf32>
    %106 = tpu.concatenate %104, %105 in 0 : vector<8x32xf32>, vector<8x32xf32> -> vector<16x32xf32>
    %107 = arith.mulf %91, %103 : vector<16x32xf32>
    %108 = arith.mulf %94, %106 : vector<16x32xf32>
    %109 = arith.subf %107, %108 : vector<16x32xf32>
    %110 = arith.addf %109, %84 : vector<16x32xf32>
    %111 = arith.mulf %91, %106 : vector<16x32xf32>
    %112 = arith.mulf %94, %103 : vector<16x32xf32>
    %113 = arith.addf %111, %112 : vector<16x32xf32>
    %114 = arith.addf %113, %88 : vector<16x32xf32>
    %115 = arith.mulf %91, %97 : vector<16x32xf32>
    %116 = arith.mulf %94, %100 : vector<16x32xf32>
    %117 = arith.subf %115, %116 : vector<16x32xf32>
    %118 = arith.mulf %91, %100 : vector<16x32xf32>
    %119 = arith.mulf %94, %97 : vector<16x32xf32>
    %120 = arith.addf %118, %119 : vector<16x32xf32>
    %c0_24 = arith.constant 0 : index
    %c0_25 = arith.constant 0 : index
    %121 = vector.load %arg9[%c0_24, %c0_25] : memref<1x64xf32, #tpu.memory_space<vmem>>, vector<1x32xf32>
    %c0_26 = arith.constant 0 : index
    %c32_27 = arith.constant 32 : index
    %122 = vector.load %arg9[%c0_26, %c32_27] : memref<1x64xf32, #tpu.memory_space<vmem>>, vector<1x32xf32>
    %123 = vector.broadcast %121 : vector<1x32xf32> to vector<16x32xf32>
    %124 = arith.mulf %117, %123 : vector<16x32xf32>
    %125 = vector.broadcast %122 : vector<1x32xf32> to vector<16x32xf32>
    %126 = arith.mulf %120, %125 : vector<16x32xf32>
    %127 = arith.subf %124, %126 : vector<16x32xf32>
    %128 = arith.addf %127, %110 : vector<16x32xf32>
    %129 = vector.broadcast %122 : vector<1x32xf32> to vector<16x32xf32>
    %130 = arith.mulf %117, %129 : vector<16x32xf32>
    %131 = vector.broadcast %121 : vector<1x32xf32> to vector<16x32xf32>
    %132 = arith.mulf %120, %131 : vector<16x32xf32>
    %133 = arith.addf %130, %132 : vector<16x32xf32>
    %134 = arith.addf %133, %114 : vector<16x32xf32>
    %135 = vector.extract_strided_slice %128 {offsets = [15, 0], sizes = [1, 32], strides = [1, 1]} : vector<16x32xf32> to vector<1x32xf32>
    %136 = vector.extract_strided_slice %134 {offsets = [15, 0], sizes = [1, 32], strides = [1, 1]} : vector<16x32xf32> to vector<1x32xf32>
    %137 = tpu.concatenate %135, %136 in 1 : vector<1x32xf32>, vector<1x32xf32> -> vector<1x64xf32>
    %c0_28 = arith.constant 0 : index
    %c0_29 = arith.constant 0 : index
    %138 = vector.load %arg9[%c0_28, %c0_29] : memref<1x64xf32, #tpu.memory_space<vmem>>, vector<1x64xf32>
    tpu.vector_store %arg9[%c0_28, %c0_29], %137 {strides = array<i32>} : memref<1x64xf32, #tpu.memory_space<vmem>>, vector<1x64xf32>,
    %139 = tpu.concatenate %128, %134 in 1 : vector<16x32xf32>, vector<16x32xf32> -> vector<16x64xf32>
    %140 = arith.truncf %139 : vector<16x64xf32> to vector<16x64xbf16>
    %c0_30 = arith.constant 0 : index
    %c0_31 = arith.constant 0 : index
    %141 = vector.load %arg5[%c0_30, %c0_31] : memref<64x16xbf16, #tpu.memory_space<vmem>>, vector<64x16xbf16>
    %cst_32 = arith.constant dense<0.000000e+00> : vector<16x16xf32>
    %142 = tpu.matmul %140, %141, %cst_32 {dimension_numbers = #tpu.dot_dimension_numbers<[1], [0], [0], [1], [0, 0, 1, 1], [], []>} : vector<16x64xbf16>, vector<64x16xbf16>, vector<16x16xf32> -> vector<16x16xf32>
    %143 = arith.addf %142, %10 : vector<16x16xf32>
    %cst_33 = arith.constant 5.000000e-01 : f32
    %144 = vector.broadcast %cst_33 : f32 to vector<16x16xf32>
    %145 = arith.mulf %144, %143 : vector<16x16xf32>
    %cst_34 = arith.constant 0.707106769 : f32
    %146 = vector.broadcast %cst_34 : f32 to vector<16x16xf32>
    %147 = arith.mulf %143, %146 : vector<16x16xf32>
    %cst_35 = arith.constant 0.000000e+00 : f32
    %148 = vector.broadcast %cst_35 : f32 to vector<16x16xf32>
    %149 = arith.cmpf oge, %147, %148 : vector<16x16xf32>
    %cst_36 = arith.constant 1.000000e+00 : f32
    %cst_37 = arith.constant -1.000000e+00 : f32
    %150 = vector.broadcast %cst_36 : f32 to vector<16x16xf32>
    %151 = vector.broadcast %cst_37 : f32 to vector<16x16xf32>
    %152 = arith.select %149, %150, %151 : vector<16x16xi1>, vector<16x16xf32>
    %153 = math.absf %147 : vector<16x16xf32>
    %cst_38 = arith.constant 0.327591091 : f32
    %154 = vector.broadcast %cst_38 : f32 to vector<16x16xf32>
    %155 = arith.mulf %154, %153 : vector<16x16xf32>
    %cst_39 = arith.constant 1.000000e+00 : f32
    %156 = vector.broadcast %cst_39 : f32 to vector<16x16xf32>
    %157 = arith.addf %156, %155 : vector<16x16xf32>
    %158 = tpu.reciprocal %157 {approx = true} : vector<16x16xf32> -> vector<16x16xf32>
    %cst_40 = arith.constant 1.06140542 : f32
    %159 = vector.broadcast %cst_40 : f32 to vector<16x16xf32>
    %160 = arith.mulf %159, %158 : vector<16x16xf32>
    %cst_41 = arith.constant -1.45315206 : f32
    %161 = vector.broadcast %cst_41 : f32 to vector<16x16xf32>
    %162 = arith.addf %160, %161 : vector<16x16xf32>
    %163 = arith.mulf %162, %158 : vector<16x16xf32>
    %cst_42 = arith.constant 1.42141378 : f32
    %164 = vector.broadcast %cst_42 : f32 to vector<16x16xf32>
    %165 = arith.addf %163, %164 : vector<16x16xf32>
    %166 = arith.mulf %165, %158 : vector<16x16xf32>
    %cst_43 = arith.constant -0.284496725 : f32
    %167 = vector.broadcast %cst_43 : f32 to vector<16x16xf32>
    %168 = arith.addf %166, %167 : vector<16x16xf32>
    %169 = arith.mulf %168, %158 : vector<16x16xf32>
    %cst_44 = arith.constant 0.254829586 : f32
    %170 = vector.broadcast %cst_44 : f32 to vector<16x16xf32>
    %171 = arith.addf %169, %170 : vector<16x16xf32>
    %172 = arith.mulf %171, %158 : vector<16x16xf32>
    %cst_45 = arith.constant 0.000000e+00 : f32
    %173 = vector.broadcast %cst_45 : f32 to vector<16x16xf32>
    %174 = arith.subf %173, %153 : vector<16x16xf32>
    %175 = arith.mulf %174, %153 : vector<16x16xf32>
    %176 = math.exp %175 : vector<16x16xf32>
    %177 = arith.mulf %172, %176 : vector<16x16xf32>
    %cst_46 = arith.constant 1.000000e+00 : f32
    %178 = vector.broadcast %cst_46 : f32 to vector<16x16xf32>
    %179 = arith.subf %178, %177 : vector<16x16xf32>
    %180 = arith.mulf %152, %179 : vector<16x16xf32>
    %cst_47 = arith.constant 1.000000e+00 : f32
    %181 = vector.broadcast %cst_47 : f32 to vector<16x16xf32>
    %182 = arith.addf %181, %180 : vector<16x16xf32>
    %183 = arith.mulf %145, %182 : vector<16x16xf32>
    %184 = arith.truncf %183 : vector<16x16xf32> to vector<16x16xbf16>
    %c0_48 = arith.constant 0 : index
    %c0_49 = arith.constant 0 : index
    %185 = vector.load %arg6[%c0_48, %c0_49] : memref<16x32xbf16, #tpu.memory_space<vmem>>, vector<16x32xbf16>
    %cst_50 = arith.constant dense<0.000000e+00> : vector<16x32xf32>
    %186 = tpu.matmul %184, %185, %cst_50 {dimension_numbers = #tpu.dot_dimension_numbers<[1], [0], [0], [1], [0, 0, 1, 1], [], []>} : vector<16x16xbf16>, vector<16x32xbf16>, vector<16x32xf32> -> vector<16x32xf32>
    %c0_51 = arith.constant 0 : index
    %c0_52 = arith.constant 0 : index
    %187 = vector.load %arg7[%c0_51, %c0_52] : memref<1x32xf32, #tpu.memory_space<vmem>>, vector<1x32xf32>
    %188 = vector.broadcast %187 : vector<1x32xf32> to vector<16x32xf32>
    %189 = arith.addf %186, %188 : vector<16x32xf32>
    %190 = vector.extract_strided_slice %189 {offsets = [0, 0], sizes = [16, 16], strides = [1, 1]} : vector<16x32xf32> to vector<16x16xf32>
    %191 = vector.extract_strided_slice %189 {offsets = [0, 16], sizes = [16, 16], strides = [1, 1]} : vector<16x32xf32> to vector<16x16xf32>
    %192 = arith.negf %191 : vector<16x16xf32>
    %193 = math.exp %192 : vector<16x16xf32>
    %cst_53 = arith.constant 1.000000e+00 : f32
    %194 = vector.broadcast %cst_53 : f32 to vector<16x16xf32>
    %195 = arith.addf %194, %193 : vector<16x16xf32>
    %196 = arith.divf %194, %195 : vector<16x16xf32>
    %197 = arith.mulf %190, %196 : vector<16x16xf32>
    %198 = arith.addf %197, %4 : vector<16x16xf32>
    %c0_54 = arith.constant 0 : index
    %c0_55 = arith.constant 0 : index
    %c0_56 = arith.constant 0 : index
    %199 = vector.load %arg8[%c0_54, %c0_55, %c0_56] : memref<1x16x16xf32, #tpu.memory_space<vmem>>, vector<1x16x16xf32>
    %200 = vector.shape_cast %199 : vector<1x16x16xf32> to vector<16x16xf32>
    %201 = vector.shape_cast %198 : vector<16x16xf32> to vector<1x16x16xf32>
    tpu.vector_store %arg8[%c0_54, %c0_55, %c0_56], %201 {strides = array<i32>} : memref<1x16x16xf32, #tpu.memory_space<vmem>>, vector<1x16x16xf32>,
    return
  }
  func.func @transform_0(%arg0: i32, %arg1: i32) -> (i32, i32, i32) {
    %c0_i32 = arith.constant 0 : i32
    %c0_i32_0 = arith.constant 0 : i32
    return %arg0, %arg1, %c0_i32 : i32, i32, i32
  }
  func.func @transform_1(%arg0: i32, %arg1: i32) -> (i32, i32) {
    %c0_i32 = arith.constant 0 : i32
    %c0_i32_0 = arith.constant 0 : i32
    %c0_i32_1 = arith.constant 0 : i32
    return %c0_i32, %c0_i32_0 : i32, i32
  }
  func.func @transform_2(%arg0: i32, %arg1: i32) -> (i32, i32) {
    %c0_i32 = arith.constant 0 : i32
    %c0_i32_0 = arith.constant 0 : i32
    %c0_i32_1 = arith.constant 0 : i32
    return %c0_i32, %c0_i32_0 : i32, i32
  }
  func.func @transform_3(%arg0: i32, %arg1: i32) -> (i32, i32) {
    %c0_i32 = arith.constant 0 : i32
    %c0_i32_0 = arith.constant 0 : i32
    %c0_i32_1 = arith.constant 0 : i32
    return %c0_i32, %c0_i32_0 : i32, i32
  }
  func.func @transform_4(%arg0: i32, %arg1: i32) -> (i32, i32) {
    %c0_i32 = arith.constant 0 : i32
    %c0_i32_0 = arith.constant 0 : i32
    %c0_i32_1 = arith.constant 0 : i32
    return %c0_i32, %c0_i32_0 : i32, i32
  }
  func.func @transform_5(%arg0: i32, %arg1: i32) -> (i32, i32) {
    %c0_i32 = arith.constant 0 : i32
    %c0_i32_0 = arith.constant 0 : i32
    %c0_i32_1 = arith.constant 0 : i32
    return %c0_i32, %c0_i32_0 : i32, i32
  }
  func.func @transform_6(%arg0: i32, %arg1: i32) -> (i32, i32, i32) {
    %c0_i32 = arith.constant 0 : i32
    %c0_i32_0 = arith.constant 0 : i32
    return %arg0, %arg1, %c0_i32 : i32, i32, i32
  }
}

</mosaic_0001>

<bundles_post_ra>
// kernel: tpu_custom_call.1
= control target key start
LH: loop header
LB: loop body
LE: loop exit
PB: predicated region body
PF: predicated region fallthrough
CT: control target
= control target key end

     0   :  { %11 = vsyncpa [#allocation4], 0  ;;  %s1646_s0 = inlined_call_operand.vmem [shape: f32[2,16,16], index: 0, kind: input, shape index: {}]   ;;  %s1647_s1 = inlined_call_operand.hbm [shape: f32[1,64], index: 1, kind: input, shape index: {}]   ;;  %s1648_s2 = inlined_call_operand.vmem [shape: bf16[16,80], index: 2, kind: input, shape index: {}]   ;;  %s1649_s3 = inlined_call_operand.vmem [shape: bf16[64,16], index: 3, kind: input, shape index: {}]   ;;  %s1650_s4 = inlined_call_operand.hbm [shape: bf16[16,32], index: 4, kind: input, shape index: {}]   ;;  %s1651_s5 = inlined_call_operand.vmem [shape: f32[1,32], index: 5, kind: input, shape index: {}]   ;;  %s1652_s6 = inlined_call_operand.hbm [shape: f32[2,16,16], index: 6, kind: output, shape index: {}]  }
   0x1   :  { %12 = vsyncpa [#allocation7], 0 }
   0x2   :  { %13 = vsyncpa [#allocation5], 0 }
   0x3   :  { %15 = vsyncpa [#allocation5 + $0x1], 0  ;;  %s1312_s21 = smov 0   ;;  %s1314_s22 = smov 0  }
   0x4   :  { %s1316_s23 = smov 0   ;;  %s1318_s24 = smov 0  }
   0x5   :  { %s1320_s25 = smov 0   ;;  %s1322_s26 = smov 0  }
   0x6 LB: > { %s958_s27 = sadd.s32 4294967295, %s1263_s26   ;;  %s959_s28 = sadd.s32 4294967294, %s1263_s26   ;;  %s1263_s26 = sphi %s1322_s26, %s21_s26   ;;  %s1259_s25 = sphi %s1320_s25, %s1661_s25   ;;  %s1255_s24 = sphi %s1318_s24, %s1660_s24   ;;  %s1251_s23 = sphi %s1316_s23, %s1659_s23   ;;  %s1247_s22 = sphi %s1314_s22, %s1658_s22   ;;  %s1243_s21 = sphi %s1312_s21, %s1657_s21  }
   0x7   : > { %s33_s29 = sadd.s32 1, %s1259_s25  ;;  %s175_s30 = sadd.s32 1, %s1251_s23 }
   0x8   : > { %p35_p0 = scmp.ge.s32.totalorder %s33_s29, 2  ;;  %p185_p1 = scmp.ne.s32.totalorder %s1251_s23, %s1247_s22 }
   0x9   : > { %p186_p2 = scmp.eq.s32.totalorder %s958_s27, 1  ;;  %p191_p3 = scmp.ne.s32.totalorder %s1247_s22, %s1243_s21 }
   0xa   : > { %s1663_s29 = smov (%p35_p0, %s33_s29), 0  ;;  %p192_p5 = scmp.eq.s32.totalorder %s959_s28, 1 }
   0xb   : > { %p1352_p4 = por %p186_p2, %p185_p1  ;;  %s170_s8 = ssub.s32 %s1259_s25, %s1663_s29 }
   0xc   : > { %p960_p6 = scmp.ge.s32.totalorder %s1263_s26, 1  ;;  %p173_p7 = scmp.eq.s32.totalorder %s170_s8, 0 }
   0xd   : > { %p1359_p8 = por %p192_p5, %p191_p3  ;;  %p199_p9 = scmp.lt.s32.totalorder %s1263_s26, 3 }
   0xe   : > { %s1365_s10 = scalar_select %p173_p7, %s1251_s23, %s175_s30  }
   0xf   : > { %p1367_p10 = pnand %p960_p6, %p199_p9  ;;  %p1371_p11 = scmp.eq.s32.totalorder %s958_s27, 0 }
  0x10   : > { %s211_s15 = sshll.u32 %s1647_s1, 4  ;;  %s1265_s16 = smov [#allocation3]   ;;  %s212_s15 = int_to_ptr.hbm [resolvable:$true] %s211_s15 }
  0x11   : > { %p1022_p12 = pneg %p1367_p10  ;;  %s213_s17 = sshll.u32 %s1265_s16, 4  ;;  %s214_s17 = int_to_ptr.vmem [resolvable:$true] %s213_s17 }
  0x12   : > { %s228_s20 = sshll.u32 %s1650_s4, 4  ;;  %s1266_s27 = smov [#allocation6]   ;;  %s229_s20 = int_to_ptr.hbm [resolvable:$true] %s228_s20 }
  0x13   : > { %p1023_p13 = pnand %p1371_p11, %p1022_p12  ;;  %s230_s28 = sshll.u32 %s1266_s27, 4  ;;  %s231_s28 = int_to_ptr.vmem [resolvable:$true] %s230_s28 }
  0x14   : > { %s1267_s30 = smov 64   ;;  %s1268_s8 = smov 4  }
  0x15   : > { %1025 = dma.hbm_to_vmem [thread:$0]  (!%p1023_p13), %s212_s15, 16, %s214_s17, [#allocation4]  }
  0x16   : > { %1028 = dma.hbm_to_vmem [thread:$0]  (!%p1023_p13), %s229_s20, 128, %s231_s28, [#allocation7], %s1267_s30, %s1267_s30, %s1268_s8  }
  0x17   : > { %262 = sbr.rel (%p1367_p10) target bundleno = 1159 (0x487), region = 44 }
  0x1c   : > { %1230 = dma.done.wait (%p1371_p11), [#allocation4], 16  }
  0x1d   : > { %1232 = vsyncadd (%p1371_p11), [#allocation4], 4294967280 }
  0x1e   : > { %1234 = dma.done.wait (%p1371_p11), [#allocation7], 128  }
  0x1f   : > { %1236 = vsyncadd (%p1371_p11), [#allocation7], 4294967168  ;;  %p303_p0 = scmp.lt.s32.totalorder %s1255_s24, 1  ;;  %v1005_v0 = vld [vmem:[%s1648_s2] sm:$0xff]  ;;  %vm331_vm0 = vcmask 130048   ;;  %vm353_vm1 = vcmask 1040384  }
  0x20   : > { %342 = vmatpush.bf16.msra.mxu0 %v1005_v0  ;;  %s1269_s12 = smov 96   ;;  %s1270_s19 = smov 32   ;;  %v1421_v8 = vld [vmem:[#allocation3] ss:$0 sm:$0xff]  ;;  %vm318_vm2 = vcmask 516096   ;;  %v1271_v14 = vmov 0.0  }
  0x21   : > { %s304_s13 = scalar_select %p303_p0, %s1255_s24, 1  ;;  %v1435_v11 = vsel %vm353_vm1, 1.0, %v1421_v8  ;;  %319 = vst.msk [vmem:[#allocation2] sm:$0x1] %vm318_vm2, %v1271_v14  ;;  %vm470_vm3 = vcmask 1041408   ;;  %vm531_vm4 = vcmask 1043456  }
  0x22   : > { %s1272_s20 = smov 64   ;;  %v426_v60 = vmul.f32 %v1421_v8, %v1435_v11  ;;  %vm639_vm5 = vcmask 261120   ;;  %vm641_vm6 = vcmask 523271   ;;  %vm687_vm7 = vcmask 523264   ;;  %s1274_s18 = smov 112  }
  0x23   : > { %s1004_s14 = sshll.u32 %s304_s13, 4  ;;  %s1011_s27 = sshll.u32 %s1255_s24, 4 }
  0x24   : > { %s310_s16 = scalar_lea.vmem %s1646_s0, %s1004_s14  ;;  %s853_s8 = scalar_lea.hbm %s1652_s6, %s1011_s27 }
  0x25   : > { %v1403_v1 = vld [vmem:[%s310_s16] sm:$0xff]  ;;  %v1405_v2 = vld [vmem:[%s310_s16 + $0x8] sm:$0xff]  ;;  %s856_s14 = sshll.u32 %s853_s8, 4  ;;  %s857_s14 = int_to_ptr.hbm [resolvable:$true] %s856_s14 }
  0x26   : > { %v322_v3 = vpack.c.bf16 %v1405_v2, %v1403_v1  ;;  %s1191_s11 = sshra.s32 %s857_s14, 4  ;;  %s1192_s11 = int_to_ptr.hbm [resolvable:$true] %s1191_s11 }
  0x27   : > { %s1193_s16 = scalar_lea.hbm %s1192_s11, 16  ;;  %p1198_p5 = scmp.lt.s32.totalorder %s1192_s11, %s1652_s6 }
  0x28   : > { %974 = vmatmul.msk.bf16.vlgmr.msra.gmra.mxu0 %vm331_vm0, %v322_v3  ;;  %v1460_v24 = vld [vmem:[#allocation2] ss:$0 sm:$0xff]  ;;  %p1194_p1 = scmp.ne.s32.totalorder %s1192_s11, %s1193_s16 }
  0x2a   : > { %p1195_p2 = pnand %p1194_p1, %p1352_p4 }
  0x2c   : > { %p1196_p3 = pneg %p1195_p2 }
  0xa5   : > { %v1410_v4 = vpop.f32.mrf.mxu0 }
  0xa6   : > { %v361_v5 = vrot.slane %v1410_v4, 7 }
  0xa8   : > { %367 = vrot.lane.b32.xlu0 %v361_v5, %s1269_s12  ;;  %v1415_v6 = vsel %vm353_vm1, 0.0, %v361_v5 }
  0xa9   : > { %400 = vrot.lane.b32.xlu2 %v1415_v6, %s1270_s19  ;;  %v374_v48 = vmul.f32 %v1421_v8, %v1415_v6 }
  0xad   : > { %v1419_v7 = vpop.f32.mrf.mxu0 }
  0xae   : > { %v362_v9 = vrot.slane %v1419_v7, 7 }
  0xb0   : > { %355 = vrot.lane.b32.xlu0 %v1421_v8, %s1269_s12  ;;  %v1427_v10 = vsel %vm353_vm1, %v361_v5, %v362_v9 }
  0xb1   : > { %369 = vrot.lane.b32.xlu1 %v1427_v10, %s1269_s12  ;;  %v375_v54 = vmul.f32 %v1421_v8, %v1427_v10 }
  0xb8   : > { %402 = vrot.lane.b32.xlu0 %v1427_v10, %s1270_s19 }
  0xc0   : > { %450 = vrot.lane.b32.xlu0 %v1435_v11, %s1270_s19  ;;  %v427_v11 = vmul.f32 %v1421_v8, %v1421_v8 }
 0x103   : > { %v401_v12 = vpop.permute.xlu2 %400 }
 0x104   : > { %v406_v13 = vmul.f32 %v1421_v8, %v401_v12 }
 0x106   : > { %410 = vrot.lane.b32.xlu0 %v406_v13, %s1269_s12 }
 0x11a   : > { %v368_v15 = vpop.permute.xlu0 %367 }
 0x11b   : > { %v373_v20 = vsel %vm353_vm1, 0.0, %v368_v15 }
 0x11c   : > { %v397_v37 = vmul.f32 %v1421_v8, %v373_v20 }
 0x122   : > { %v1441_v16 = vpop.permute.xlu0 %355 }
 0x123   : > { %v1443_v17 = vpop.permute.xlu1 %369  ;;  %v358_v18 = vsel %vm353_vm1, 0.0, %v1441_v16 }
 0x124   : > { %429 = vrot.lane.b32.xlu1 %v358_v18, %s1270_s19  ;;  %379 = vrot.lane.b32.xlu2 %v1443_v17, %s1270_s19  ;;  %v447_v42 = vmul.f32 %v1421_v8, %v358_v18  ;;  %v398_v3 = vmul.f32 %v1421_v8, %v1443_v17 }
 0x12a   : > { %v403_v19 = vpop.permute.xlu0 %402 }
 0x12b   : > { %v407_v21 = vmul.f32 %v1421_v8, %v403_v19 }
 0x12c   : > { %377 = vrot.lane.b32.xlu1 %v373_v20, %s1270_s19  ;;  %431 = vrot.lane.b32.xlu2 %v1441_v16, %s1270_s19 }
 0x12d   : > { %412 = vrot.lane.b32.xlu0 %v407_v21, %s1269_s12 }
 0x132   : > { %v451_v22 = vpop.permute.xlu0 %450 }
 0x133   : > { %v456_v23 = vmul.f32 %v1421_v8, %v451_v22 }
 0x134   : > { %452 = vrot.lane.b32.xlu1 %v1421_v8, %s1270_s19 }
 0x135   : > { %460 = vrot.lane.b32.xlu0 %v456_v23, %s1269_s12 }
 0x13c   : > { %418 = vrot.lane.b32.xlu1 %v1410_v4, %s1269_s12 }
 0x13d   : > { %618 = vrot.lane.b32.xlu0 %v1460_v24, %s1269_s12 }
 0x145   : > { %681 = vrot.lane.b32.xlu0 %v1410_v4, %s1272_s20 }
 0x178   : > { %v411_v30 = vpop.permute.xlu0 %410 }
 0x179   : > { %v416_v38 = vadd.f32 %v411_v30, %v397_v37 }
 0x17e   : > { %v380_v25 = vpop.permute.xlu2 %379 }
 0x17f   : > { %v384_v35 = vmul.f32 %v1421_v8, %v380_v25 }
 0x186   : > { %v432_v26 = vpop.permute.xlu2 %431 }
 0x187   : > { %v436_v27 = vmul.f32 %v1421_v8, %v432_v26 }
 0x189   : > { %441 = vrot.lane.b32.xlu2 %v436_v27, %s1269_s12 }
 0x196   : > { %v430_v28 = vpop.permute.xlu1 %429 }
 0x197   : > { %v435_v29 = vmul.f32 %v1421_v8, %v430_v28 }
 0x199   : > { %439 = vrot.lane.b32.xlu1 %v435_v29, %s1269_s12 }
 0x19e   : > { %v378_v31 = vpop.permute.xlu1 %377 }
 0x19f   : > { %v383_v32 = vmul.f32 %v1421_v8, %v378_v31  ;;  %v413_v33 = vpop.permute.xlu0 %412 }
 0x1a0   : > { %v417_v12 = vadd.f32 %v413_v33, %v398_v3 }
 0x1a1   : > { %387 = vrot.lane.b32.xlu2 %v383_v32, %s1269_s12 }
 0x1a6   : > { %v453_v34 = vpop.permute.xlu1 %452 }
 0x1a7   : > { %v457_v36 = vmul.f32 %v1421_v8, %v453_v34  ;;  %v461_v40 = vpop.permute.xlu0 %460 }
 0x1a8   : > { %v1485_v44 = vadd.f32 %v461_v40, %v447_v42 }
 0x1a9   : > { %389 = vrot.lane.b32.xlu2 %v384_v35, %s1269_s12  ;;  %462 = vrot.lane.b32.xlu1 %v457_v36, %s1269_s12 }
 0x1aa   : > { %v479_v61 = vrot.slane %v1485_v44, 6 }
 0x1ae   : > { %v419_v39 = vpop.permute.xlu1 %418 }
 0x1af   : > { %v1479_v41 = vadd.f32 %v419_v39, %v416_v38 }
 0x1b1   : > { %v495_v43 = vrot.slane %v1479_v41, 6  ;;  %420 = vrot.lane.b32.xlu2 %v1419_v7, %s1269_s12  ;;  %s299_s12 = sand.u32 1, %s1247_s22  }
 0x1b2   : > { %s840_s15 = scalar_lea.sflag [#allocation5], %s299_s12 }
 0x1b3   : > { %v500_v45 = vsel %vm470_vm3, 0.0, %v495_v43 }
 0x1b4   : > { %v503_v46 = vmul.f32 %v500_v45, %v1485_v44 }
 0x1e3   : > { %v442_v47 = vpop.permute.xlu2 %441 }
 0x1e4   : > { %v446_v28 = vsub.f32 %v427_v11, %v442_v47 }
 0x1fb   : > { %v388_v49 = vpop.permute.xlu2 %387 }
 0x1fc   : > { %v393_v50 = vsub.f32 %v374_v48, %v388_v49 }
 0x1fe   : > { %v395_v51 = vadd.f32 %v393_v50, %v1410_v4  ;;  %v484_v4 = vsel %vm470_vm3, 0.0, %v479_v61  ;;  %v448_v50 = vmul.f32 %v1421_v8, %v1441_v16 }
 0x1ff   : > { %v519_v15 = vmul.f32 %v484_v4, %v1485_v44 }
 0x200   : > { %v487_v52 = vrot.slane %v395_v51, 6 }
 0x202   : > { %v492_v53 = vsel %vm470_vm3, 0.0, %v487_v52 }
 0x203   : > { %v511_v55 = vmul.f32 %v492_v53, %v1485_v44  ;;  %v390_v56 = vpop.permute.xlu2 %389 }
 0x204   : > { %v394_v57 = vsub.f32 %v375_v54, %v390_v56 }
 0x206   : > { %v1499_v58 = vadd.f32 %v394_v57, %v1419_v7 }
 0x208   : > { %v488_v59 = vrot.slane %v1499_v58, 6 }
 0x20a   : > { %v489_v62 = vsel %vm470_vm3, %v487_v52, %v488_v59 }
 0x20b   : > { %v440_v63 = vpop.permute.xlu1 %439  ;;  %v421_v10 = vpop.permute.xlu2 %420  ;;  %v502_v57 = vmul.f32 %v489_v62, %v446_v28 }
 0x20c   : > { %v445_v0 = vsub.f32 %v426_v60, %v440_v63  ;;  %v425_v20 = vadd.f32 %v421_v10, %v417_v12  ;;  %v619_v12 = vpop.permute.xlu0 %618 }
 0x20e   : > { %v471_v5 = vrot.slane %v445_v0, 6  ;;  %v501_v6 = vmul.f32 %v492_v53, %v445_v0  ;;  %v509_v9 = vmul.f32 %v500_v45, %v445_v0  ;;  %v523_v19 = vmul.f32 %v484_v4, %v445_v0 }
 0x20f   : > { %v496_v31 = vrot.slane %v425_v20, 6  ;;  %v472_v45 = vrot.slane %v446_v28, 6 }
 0x210   : > { %v476_v13 = vsel %vm470_vm3, 1.0, %v471_v5  ;;  %v505_v14 = vsub.f32 %v501_v6, %v503_v46  ;;  %v513_v22 = vadd.f32 %v511_v55, %v509_v9 }
 0x211   : > { %v517_v18 = vmul.f32 %v476_v13, %v445_v0  ;;  %v525_v17 = vmul.f32 %v476_v13, %v1485_v44  ;;  %v497_v49 = vsel %vm470_vm3, %v495_v43, %v496_v31  ;;  %v473_v52 = vsel %vm470_vm3, %v471_v5, %v472_v45 }
 0x212   : > { %v1516_v21 = vadd.f32 %v505_v14, %v395_v51  ;;  %v1523_v26 = vadd.f32 %v513_v22, %v1479_v41  ;;  %v510_v63 = vmul.f32 %v497_v49, %v446_v28  ;;  %v518_v16 = vmul.f32 %v473_v52, %v446_v28 }
 0x213   : > { %v1518_v23 = vsub.f32 %v517_v18, %v519_v15  ;;  %v1520_v25 = vadd.f32 %v525_v17, %v523_v19 }
 0x214   : > { %v548_v27 = vrot.slane %v1516_v21, 4  ;;  %v556_v33 = vrot.slane %v1523_v26, 4 }
 0x215   : > { %v532_v29 = vrot.slane %v1518_v23, 4  ;;  %v540_v30 = vrot.slane %v1520_v25, 4 }
 0x216   : > { %v553_v32 = vsel %vm531_vm4, 0.0, %v548_v27  ;;  %v561_v38 = vsel %vm531_vm4, 0.0, %v556_v33 }
 0x217   : > { %v537_v34 = vsel %vm531_vm4, 1.0, %v532_v29  ;;  %v545_v35 = vsel %vm531_vm4, 0.0, %v540_v30  ;;  %v562_v36 = vmul.f32 %v553_v32, %v1518_v23  ;;  %v572_v37 = vmul.f32 %v553_v32, %v1520_v25 }
 0x218   : > { %v578_v39 = vmul.f32 %v537_v34, %v1518_v23  ;;  %v580_v40 = vmul.f32 %v545_v35, %v1520_v25  ;;  %v584_v42 = vmul.f32 %v545_v35, %v1518_v23  ;;  %v564_v46 = vmul.f32 %v561_v38, %v1520_v25 }
 0x219   : > { %v570_v47 = vmul.f32 %v561_v38, %v1518_v23  ;;  %v586_v48 = vmul.f32 %v537_v34, %v1520_v25 }
 0x21a   : > { %v1552_v51 = vsub.f32 %v578_v39, %v580_v40  ;;  %v566_v56 = vsub.f32 %v562_v36, %v564_v46 }
 0x21b   : > { %v463_v53 = vpop.permute.xlu1 %462  ;;  %v574_v54 = vadd.f32 %v572_v37, %v570_v47  ;;  %v1555_v55 = vadd.f32 %v586_v48, %v584_v42 }
 0x21c   : > { %v467_v59 = vadd.f32 %v463_v53, %v448_v50  ;;  %v590_v60 = vmul.f32 0.0, %v1552_v51  ;;  %v568_v8 = vadd.f32 %v566_v56, %v1516_v21 }
 0x21d   : > { %v576_v41 = vadd.f32 %v574_v54, %v1523_v26  ;;  %v592_v43 = vmul.f32 0.0, %v1555_v55 }
 0x21e   : > { %v480_v0 = vrot.slane %v467_v59, 6  ;;  %v504_v3 = vmul.f32 %v497_v49, %v467_v59  ;;  %v512_v4 = vmul.f32 %v489_v62, %v467_v59  ;;  %v610_v9 = vadd.f32 %v590_v60, %v1555_v55 }
 0x21f   : > { %v600_v5 = vadd.f32 %v592_v43, %v590_v60  ;;  %v606_v6 = vsub.f32 %v1552_v51, %v592_v43  ;;  %v594_v10 = vsub.f32 %v590_v60, %v592_v43  ;;  %v526_v14 = vmul.f32 %v473_v52, %v467_v59 }
 0x220   : > { %v481_v11 = vsel %vm470_vm3, %v479_v61, %v480_v0  ;;  %v506_v13 = vsub.f32 %v502_v57, %v504_v3  ;;  %v514_v15 = vadd.f32 %v512_v4, %v510_v63  ;;  %v629_v26 = vmul.f32 %v1460_v24, %v610_v9 }
 0x221   : > { %v520_v18 = vmul.f32 %v481_v11, %v467_v59  ;;  %v524_v19 = vmul.f32 %v481_v11, %v446_v28  ;;  %v602_v17 = vadd.f32 %v600_v5, %v576_v41  ;;  %v627_v22 = vmul.f32 %v619_v12, %v606_v6 }
 0x222   : > { %v508_v62 = vadd.f32 %v506_v13, %v1499_v58  ;;  %v516_v31 = vadd.f32 %v514_v15, %v425_v20  ;;  %v596_v32 = vadd.f32 %v594_v10, %v568_v8  ;;  %v621_v36 = vmul.f32 %v619_v12, %v610_v9 }
 0x223   : > { %v522_v34 = vsub.f32 %v518_v16, %v520_v18  ;;  %v528_v35 = vadd.f32 %v526_v14, %v524_v19  ;;  %v616_v44 = vmul.f32 %v1460_v24, %v606_v6  ;;  %v631_v37 = vadd.f32 %v629_v26, %v627_v22 }
 0x224   : > { %v549_v61 = vrot.slane %v508_v62, 4  ;;  %v557_v38 = vrot.slane %v516_v31, 4 }
 0x225   : > { %v533_v39 = vrot.slane %v522_v34, 4  ;;  %v541_v40 = vrot.slane %v528_v35, 4  ;;  %v623_v42 = vsub.f32 %v616_v44, %v621_v36  ;;  %v633_v28 = vadd.f32 %v631_v37, %v602_v17 }
 0x226   : > { %v550_v58 = vsel %vm531_vm4, %v548_v27, %v549_v61  ;;  %v558_v45 = vsel %vm531_vm4, %v556_v33, %v557_v38 }
 0x227   : > { %v534_v20 = vsel %vm531_vm4, %v532_v29, %v533_v39  ;;  %v542_v46 = vsel %vm531_vm4, %v540_v30, %v541_v40  ;;  %v563_v47 = vmul.f32 %v550_v58, %v522_v34  ;;  %v565_v48 = vmul.f32 %v558_v45, %v528_v35  ;;  %644 = vrot.lane.b32.xlu2 %v633_v28, %s1270_s19 }
 0x228   : > { %v571_v49 = vmul.f32 %v558_v45, %v522_v34  ;;  %v573_v50 = vmul.f32 %v550_v58, %v528_v35  ;;  %v579_v52 = vmul.f32 %v534_v20, %v522_v34  ;;  %v581_v21 = vmul.f32 %v542_v46, %v528_v35 }
 0x229   : > { %v585_v53 = vmul.f32 %v542_v46, %v522_v34  ;;  %v587_v27 = vmul.f32 %v534_v20, %v528_v35  ;;  %v625_v54 = vadd.f32 %v623_v42, %v596_v32  ;;  %v567_v33 = vsub.f32 %v563_v47, %v565_v48  ;;  %v682_v32 = vpop.permute.xlu0 %681 }
 0x22a   : > { %v575_v56 = vadd.f32 %v573_v50, %v571_v49  ;;  %v583_v23 = vsub.f32 %v579_v52, %v581_v21  ;;  %v1010_v49 = vld [vmem:[#allocation6] sm:$0xff] }
 0x22b   : > { %v589_v57 = vadd.f32 %v587_v27, %v585_v53  ;;  %v569_v29 = vadd.f32 %v567_v33, %v508_v62  ;;  %780 = vmatpush.bf16.msra.mxu2 %v1010_v49 }
 0x22c   : > { %v577_v59 = vadd.f32 %v575_v56, %v516_v31  ;;  %v598_v25 = vmul.f32 %v583_v23, %v576_v41  ;;  %v604_v30 = vmul.f32 %v583_v23, %v1552_v51  ;;  %v608_v60 = vmul.f32 %v1555_v55, %v583_v23 }
 0x22d   : > { %v599_v63 = vmul.f32 %v589_v57, %v568_v8  ;;  %v605_v43 = vmul.f32 %v589_v57, %v1555_v55  ;;  %v609_v16 = vmul.f32 %v589_v57, %v1552_v51  ;;  %v591_v0 = vmul.f32 %v583_v23, %v568_v8  ;;  %v1009_v51 = vld [vmem:[%s1649_s3 + $0x18] sm:$0xff]  ;;  %v1006_v8 = vld [vmem:[%s1649_s3] sm:$0xff] }
 0x22e   : > { %v593_v3 = vmul.f32 %v589_v57, %v576_v41  ;;  %695 = vmatpush.bf16.msra.mxu1 %v1009_v51  ;;  %v1008_v41 = vld [vmem:[%s1649_s3 + $0x10] sm:$0xff] }
 0x22f   : > { %v601_v4 = vadd.f32 %v599_v63, %v598_v25  ;;  %v607_v5 = vsub.f32 %v604_v30, %v605_v43  ;;  %v611_v6 = vadd.f32 %v609_v16, %v608_v60 }
 0x230   : > { %v595_v9 = vsub.f32 %v591_v0, %v593_v3 }
 0x231   : > { %v603_v10 = vadd.f32 %v601_v4, %v577_v59  ;;  %v628_v11 = vmul.f32 %v619_v12, %v607_v5  ;;  %v630_v13 = vmul.f32 %v1460_v24, %v611_v6  ;;  %v622_v14 = vmul.f32 %v619_v12, %v611_v6 }
 0x232   : > { %v597_v15 = vadd.f32 %v595_v9, %v569_v29  ;;  %v617_v18 = vmul.f32 %v1460_v24, %v607_v5  ;;  %696 = vmatpush.bf16.msra.mxu1 %v1008_v41  ;;  %v1007_v24 = vld [vmem:[%s1649_s3 + $0x8] sm:$0xff] }
 0x233   : > { %v632_v19 = vadd.f32 %v630_v13, %v628_v11  ;;  %v1273_v13 = vmov -1.0  }
 0x234   : > { %v624_v17 = vsub.f32 %v617_v18, %v622_v14 }
 0x235   : > { %v634_v22 = vadd.f32 %v632_v19, %v603_v10 }
 0x236   : > { %v626_v55 = vadd.f32 %v624_v17, %v597_v15  ;;  %697 = vmatpush.bf16.msra.mxu1 %v1007_v24 }
 0x237   : > { %636 = vrot.lane.b32.xlu1 %v634_v22, %s1270_s19  ;;  %s967_s19 = sshll.u32 %s299_s12, 4 }
 0x23a   : > { %698 = vmatpush.bf16.msra.mxu1 %v1006_v8 }
 0x23f   : > { %683 = vrot.lane.b32.xlu1 %v1419_v7, %s1272_s20  ;;  %s301_s20 = scalar_lea.vmem [#allocation8], %s967_s19 }
 0x240   : > { %s854_s13 = sshll.u32 %s301_s20, 4  ;;  %s855_s13 = int_to_ptr.vmem [resolvable:$true] %s854_s13 }
 0x281   : > { %v645_v7 = vpop.permute.xlu2 %644 }
 0x282   : > { %v647_v62 = vsel %vm639_vm5, %v625_v54, %v645_v7 }
 0x2a9   : > { %v637_v12 = vpop.permute.xlu1 %636 }
 0x2aa   : > { %v640_v26 = vsel %vm639_vm5, %v626_v55, %v637_v12 }
 0x2ab   : > { %642 = vst.msk [vmem:[#allocation2 - $0x7] sm:$0x80] %vm641_vm6, %v640_v26  ;;  %v648_v31 = vpack.c.bf16 %v640_v26, %v647_v62  ;;  %v1100_v62 = vld [vmem:[%s1651_s5] ss:$0 sm:$0xff] }
 0x2ad   : > { %991 = vmatmul.msk.bf16.vlgmr.msra.gmra.mxu1 %vm687_vm7, %v648_v31 }
 0x2b1   : > { %v684_v61 = vpop.permute.xlu1 %683 }
 0x32a   : > { %v700_v34 = vpop.f32.mrf.mxu1 }
 0x32b   : > { %v701_v35 = vadd.f32 %v700_v34, %v682_v32 }
 0x32d   : > { %v707_v36 = vmul.f32 0.70710677, %v701_v35  ;;  %v705_v51 = vmul.f32 0.5, %v701_v35 }
 0x32f   : > { %v713_v44 = vand.u32 2147483647, %v707_v36  ;;  %vm709_vm8 = vcmp.ge.f32.partialorder %v707_v36, 0.0 }
 0x330   : > { %v711_v14 = vsel %vm709_vm8, 1.0, %v1273_v13 }
 0x331   : > { %v715_v37 = vmul.f32 0.3275911, %v713_v44  ;;  %v739_v20 = vsub.f32 0.0, %v713_v44 }
 0x332   : > { %v702_v38 = vpop.f32.mrf.mxu1 }
 0x333   : > { %v717_v39 = vadd.f32 1.0, %v715_v37  ;;  %v703_v40 = vadd.f32 %v702_v38, %v684_v61  ;;  %v741_v50 = vmul.f32 %v739_v20, %v713_v44 }
 0x335   : > { %1101 = vrcp.f32 %v717_v39  ;;  %v708_v42 = vmul.f32 0.70710677, %v703_v40  ;;  %v743_v27 = vmul.f32 1.442695, %v741_v50  ;;  %v706_v41 = vmul.f32 0.5, %v703_v40 }
 0x337   : > { %v714_v28 = vand.u32 2147483647, %v708_v42  ;;  %vm710_vm9 = vcmp.ge.f32.partialorder %v708_v42, 0.0 }
 0x338   : > { %v712_v17 = vsel %vm710_vm9, 1.0, %v1273_v13 }
 0x339   : > { %v716_v58 = vmul.f32 0.3275911, %v714_v28  ;;  %v740_v54 = vsub.f32 0.0, %v714_v28 }
 0x33b   : > { %v1102_v45 = vpop.eup %1101  ;;  %v718_v46 = vadd.f32 1.0, %v716_v58  ;;  %v742_v29 = vmul.f32 %v740_v54, %v714_v28 }
 0x33c   : > { %v721_v47 = vmul.f32 1.0614054, %v1102_v45 }
 0x33d   : > { %1103 = vrcp.f32 %v718_v46  ;;  %v745_v63 = vmul.f32 1.442695, %v742_v29 }
 0x33e   : > { %v723_v48 = vadd.f32 -1.4531521, %v721_v47  ;;  %1105 = vpow2.f32 %v743_v27 }
 0x33f   : > { %1107 = vpow2.f32 %v745_v63 }
 0x340   : > { %v725_v52 = vmul.f32 %v1102_v45, %v723_v48 }
 0x342   : > { %v727_v21 = vadd.f32 1.4214138, %v725_v52 }
 0x343   : > { %v1104_v53 = vpop.eup %1103 }
 0x344   : > { %v729_v33 = vmul.f32 %v1102_v45, %v727_v21  ;;  %v722_v56 = vmul.f32 1.0614054, %v1104_v53  ;;  %v1106_v0 = vpop.eup %1105 }
 0x345   : > { %v1108_v11 = vpop.eup %1107 }
 0x346   : > { %v731_v23 = vadd.f32 -0.28449672, %v729_v33  ;;  %v724_v57 = vadd.f32 -1.4531521, %v722_v56 }
 0x348   : > { %v733_v59 = vmul.f32 %v1102_v45, %v731_v23  ;;  %v726_v25 = vmul.f32 %v1104_v53, %v724_v57 }
 0x34a   : > { %v735_v30 = vadd.f32 0.2548296, %v733_v59  ;;  %v728_v60 = vadd.f32 1.4214138, %v726_v25 }
 0x34c   : > { %v737_v43 = vmul.f32 %v1102_v45, %v735_v30  ;;  %v730_v16 = vmul.f32 %v1104_v53, %v728_v60 }
 0x34e   : > { %v747_v3 = vmul.f32 %v1106_v0, %v737_v43  ;;  %v732_v4 = vadd.f32 -0.28449672, %v730_v16 }
 0x350   : > { %v734_v5 = vmul.f32 %v1104_v53, %v732_v4  ;;  %v749_v6 = vsub.f32 1.0, %v747_v3 }
 0x352   : > { %v736_v9 = vadd.f32 0.2548296, %v734_v5  ;;  %v751_v15 = vmul.f32 %v749_v6, %v711_v14 }
 0x354   : > { %v738_v10 = vmul.f32 %v1104_v53, %v736_v9  ;;  %v753_v22 = vadd.f32 1.0, %v751_v15 }
 0x356   : > { %v748_v18 = vmul.f32 %v1108_v11, %v738_v10  ;;  %v755_v8 = vmul.f32 %v753_v22, %v705_v51 }
 0x358   : > { %v750_v19 = vsub.f32 1.0, %v748_v18 }
 0x35a   : > { %v752_v55 = vmul.f32 %v750_v19, %v712_v17 }
 0x35c   : > { %v754_v24 = vadd.f32 1.0, %v752_v55 }
 0x35e   : > { %v756_v7 = vmul.f32 %v754_v24, %v706_v41 }
 0x360   : > { %v757_v12 = vpack.c.bf16 %v756_v7, %v755_v8 }
 0x362   : > { %996 = vmatmul.msk.bf16.vlgmr.msra.gmra.mxu2 %vm331_vm0, %v757_v12 }
 0x3e5   : > { %v782_v26 = vpop.f32.mrf.mxu2 }
 0x3e6   : > { %v783_v31 = vadd.f32 %v1100_v62, %v782_v26 }
 0x3e8   : > { %v997_v32 = vmul.f32 -1.442695, %v783_v31 }
 0x3ea   : > { %1109 = vpow2.f32 %v997_v32 }
 0x3ed   : > { %v784_v34 = vpop.f32.mrf.mxu2 }
 0x3ee   : > { %v785_v36 = vadd.f32 %v1100_v62, %v784_v34 }
 0x3f0   : > { %v1110_v44 = vpop.eup %1109  ;;  %v998_v37 = vmul.f32 -1.442695, %v785_v36 }
 0x3f1   : > { %v793_v35 = vadd.f32 1.0, %v1110_v44 }
 0x3f2   : > { %1111 = vpow2.f32 %v998_v37 }
 0x3f3   : > { %1113 = vrcp.f32 %v793_v35  ;;  %v806_v28 = vand.u32 2147483648, %v793_v35  ;;  %v804_v45 = vand.u32 2147483647, %v793_v35  ;;  %vm800_vm11 = vweird.f32 %v793_v35 }
 0x3f5   : > { %v807_v47 = vor.u32 1.1754944e-38, %v806_v28  ;;  %vm805_vm13 = vcmp.eq.f32.partialorder %v804_v45, 8.507059e+37 }
 0x3f8   : > { %v1112_v61 = vpop.eup %1111 }
 0x3f9   : > { %v1114_v38 = vpop.eup %1113  ;;  %v794_v39 = vadd.f32 1.0, %v1112_v61 }
 0x3fa   : > { %v796_v40 = vmul.f32 %v1114_v38, %v793_v35  ;;  %vm801_vm10 = vweird.f32 %v1114_v38 }
 0x3fb   : > { %1115 = vrcp.f32 %v794_v39  ;;  %vm802_vm12 = vmor %vm800_vm11, %vm801_vm10  ;;  %v821_v21 = vand.u32 2147483648, %v794_v39  ;;  %v819_v27 = vand.u32 2147483647, %v794_v39  ;;  %vm815_vm15 = vweird.f32 %v794_v39 }
 0x3fc   : > { %v797_v42 = vsub.f32 1.0, %v796_v40 }
 0x3fd   : > { %v822_v33 = vor.u32 1.1754944e-38, %v821_v21  ;;  %vm820_vm2 = vcmp.eq.f32.partialorder %v819_v27, 8.507059e+37 }
 0x3fe   : > { %v798_v58 = vmul.f32 %v1114_v38, %v797_v42 }
 0x400   : > { %v799_v20 = vadd.f32 %v1114_v38, %v798_v58 }
 0x401   : > { %v1116_v46 = vpop.eup %1115 }
 0x402   : > { %v803_v48 = vsel %vm802_vm12, %v1114_v38, %v799_v20  ;;  %v811_v49 = vmul.f32 %v1116_v46, %v794_v39  ;;  %vm816_vm14 = vweird.f32 %v1116_v46 }
 0x403   : > { %v808_v50 = vsel %vm805_vm13, %v807_v47, %v803_v48  ;;  %vm817_vm1 = vmor %vm815_vm15, %vm816_vm14 }
 0x404   : > { %827 = vrot.lane.b32.xlu2 %v808_v50, %s1274_s18  ;;  %v812_v52 = vsub.f32 1.0, %v811_v49 }
 0x406   : > { %v813_v53 = vmul.f32 %v1116_v46, %v812_v52 }
 0x408   : > { %v814_v54 = vadd.f32 %v1116_v46, %v813_v53 }
 0x40a   : > { %v818_v56 = vsel %vm817_vm1, %v1116_v46, %v814_v54 }
 0x40b   : > { %v823_v23 = vsel %vm820_vm2, %v822_v33, %v818_v56 }
 0x40c   : > { %829 = vrot.lane.b32.xlu0 %v823_v23, %s1274_s18  ;;  %s1197_s18 = scalar_lea.hbm %s1652_s6, 32 }
 0x40d   : > { %p1199_p6 = scmp.lt.s32.totalorder %s1197_s18, %s1193_s16 }
 0x40f   : > { %p1200_p7 = por %p1199_p6, %p1198_p5 }
 0x411   : > { %p1201_p9 = pnand %p1200_p7, %p1196_p3 }
 0x45e   : > { %v828_v57 = vpop.permute.xlu2 %827 }
 0x45f   : > { %v833_v29 = vmul.f32 %v828_v57, %v783_v31 }
 0x461   : > { %v835_v59 = vadd.f32 %v833_v29, %v1403_v1 }
 0x463   : > { %837 = vst.msk [vmem:[%s301_s20] sm:$0xff] %vm331_vm0, %v835_v59 }
 0x47e   : > { %v830_v25 = vpop.permute.xlu0 %829 }
 0x47f   : > { %v834_v30 = vmul.f32 %v830_v25, %v785_v36 }
 0x481   : > { %v836_v60 = vadd.f32 %v834_v30, %v1405_v2 }
 0x483   : > { %838 = vst.msk [vmem:[%s301_s20 + $0x8] sm:$0xff] %vm331_vm0, %v836_v60 }
 0x484   : > { %1204 = shalt.err (!%p1201_p9)
}
 0x485   : > { %s1275_s12 = smov 128   ;;  %s1276_s20 = smov 8  }
 0x486   : > { %1020 = dma.vmem_to_hbm [thread:$0]  (%p1352_p4), %s855_s13, 256, %s857_s14, %s840_s15, %s1275_s12, %s1275_s12, %s1276_s20  }
 0x487 PF: > { %p1037_p10 = scmp.ge.s32.totalorder %s1263_s26, 2  ;;  %s871_s28 = sand.u32 1, %s1243_s21  }
 0x488   : > { %s872_s30 = scalar_lea.sflag [#allocation5], %s871_s28 }
 0x489   : > { %p1030_p11 = pnand %p1037_p10, %p1359_p8 }
 0x48b   : > { %p1031_p12 = pneg %p1030_p11 }
 0x48d   : > { %1238 = dma.done.wait (%p1031_p12), %s872_s30, 256  }
 0x48e   : > { %1240 = vsyncadd (%p1031_p12), %s872_s30, 4294967040  ;;  %s21_s26 = sadd.s32 1, %s1263_s26   ;;  %s1657_s21 = smov %s1247_s22 }
 0x48f   : > { %p18_p13 = scmp.ge.s32.totalorder %s21_s26, 4   ;;  %s1658_s22 = smov %s1251_s23 }
 0x490   : > { %s1659_s23 = smov %s1365_s10  ;;  %s1660_s24 = smov %s1259_s25 }
 0x491   : > { %s1661_s25 = smov %s1663_s29  ;;  %20 = sbr.rel (!%p18_p13) target bundleno = 6 (0x6), region = 92 }
 0x496   :  { %878 = vsyncpa [#allocation4], 1 }
 0x497   :  { %880 = vsyncpa [#allocation4 + $0x1], 1 }
 0x498   :  { %881 = vsyncpa [#allocation7], 1 }
 0x499   :  { %882 = vsyncpa [#allocation5], 1 }
 0x49a   :  { %884 = vsyncpa [#allocation5 + $0x1], 1 }

</bundles_post_ra>
